<compile_context>
chip_gen: v7x
topology: tpu7x:2x2x1
jax: 0.10.0
libtpu: 0.0.40
codegen_flags: <defaults>
</compile_context>

<pallas_src>
import jax
import jax.numpy as jnp
import numpy as np
from jax.experimental import pallas as pl
from jax.experimental.pallas import tpu as pltpu

# ---- module-consistent small shapes ----
B, S = 2, 8                       # batch, sequence length
D_MODEL, NUM_HEADS, FF_DIM = 16, 2, 64
DK = D_MODEL // NUM_HEADS         # true per-head dim
DK_PAD = D_MODEL                  # per-head dim zero-padded so every attention
                                  # slab entry shares one (D, D) tile shape
LN_EPS = 1e-6
SCALE = 1.0 / (DK ** 0.5)


def _layernorm(x, g, b, eps):
    m = jnp.mean(x, axis=-1, keepdims=True)
    c = x - m
    v = jnp.mean(c * c, axis=-1, keepdims=True)
    return c * jax.lax.rsqrt(v + eps) * g + b


def encoder_layer_kernel(x_ref, attn_w_ref, ffn_w_ref, vec_ref, out_ref):
    n, d = x_ref.shape                         # (B*S, D)
    nh = NUM_HEADS

    x = x_ref[...]                             # (N, D) f32
    xb = x.astype(jnp.bfloat16)
    w = attn_w_ref[...].astype(jnp.bfloat16)   # (3*nh + nh, D, DK_PAD)
    ffw = ffn_w_ref[...].astype(jnp.bfloat16)  # (2, FF, D)
    vec = vec_ref[...]                         # (8, FF) f32

    b_h = vec[0:1, :d]
    ln1_g = vec[1:2, :d]
    ln1_b = vec[2:3, :d]
    ff1_b = vec[3:4, :]
    ff2_b = vec[4:5, :d]
    ln2_g = vec[5:6, :d]
    ln2_b = vec[6:7, :d]

    # ---- multi-head attention -------------------------------------------
    # Fused head-major Q/K/V projection: one batched dot over the 3*nh stacked
    # (D, DK_PAD) matrices; q/k/v are read on the leading (free) axis.
    xg = jnp.broadcast_to(xb[None], (3 * nh, n, d))
    qkv = jnp.einsum('gnd,gde->gne', xg, w[:3 * nh],
                     preferred_element_type=jnp.float32)      # (3*nh, N, DK_PAD)
    q = qkv[0:nh]
    k = qkv[nh:2 * nh]
    v = qkv[2 * nh:3 * nh]

    scores = jnp.einsum('hqd,hkd->hqk',
                        q.astype(jnp.bfloat16), k.astype(jnp.bfloat16),
                        preferred_element_type=jnp.float32) * SCALE  # (nh, N, N)

    # block-diagonal mask == independent attention per batch element
    # (float floor trick: avoids integer division inside the kernel)
    q_blk = jnp.floor(jax.lax.broadcasted_iota(jnp.int32, (n, n), 0)
                      .astype(jnp.float32) * (1.0 / S))
    k_blk = jnp.floor(jax.lax.broadcasted_iota(jnp.int32, (n, n), 1)
                      .astype(jnp.float32) * (1.0 / S))
    scores = jnp.where((q_blk == k_blk)[None], scores, -1e30)

    scores = scores - jnp.max(scores, axis=-1, keepdims=True)
    e = jnp.exp(scores)
    a = e * pl.reciprocal(jnp.sum(e, axis=-1, keepdims=True), approx=True)
    # TODO(synk): nn.Dropout on the attention weights is skipped (eval mode).

    ctx = jnp.einsum('hqk,hkd->hqd',
                     a.astype(jnp.bfloat16), v.astype(jnp.bfloat16),
                     preferred_element_type=jnp.float32)       # (nh, N, DK_PAD)
    ctxb = ctx.astype(jnp.bfloat16)

    # output projection: sum over heads of ctx_h @ Wh_rows_h (no lane concat)
    attn = jnp.dot(ctxb[0], w[3 * nh + 0], preferred_element_type=jnp.float32)
    for hi in range(1, nh):
        attn = attn + jnp.dot(ctxb[hi], w[3 * nh + hi],
                              preferred_element_type=jnp.float32)
    attn = attn + b_h

    out1 = _layernorm(x + attn, ln1_g, ln1_b, LN_EPS)

    # ---- FFN ---------------------------------------------------------------
    out1b = out1.astype(jnp.bfloat16)
    h1 = jnp.einsum('nd,fd->nf', out1b, ffw[0],
                    preferred_element_type=jnp.float32) + ff1_b   # (N, FF)
    h1 = jnp.maximum(h1, 0.0)
    ffn_out = jnp.einsum('nf,fd->nd', h1.astype(jnp.bfloat16), ffw[1],
                         preferred_element_type=jnp.float32) + ff2_b

    out2 = _layernorm(out1 + ffn_out, ln2_g, ln2_b, LN_EPS)
    out_ref[...] = out2


def pack_params(params):
    """Pack the 13 small parameter tensors into 3 slabs (wrapper-side layout)."""
    (wq, wk, wv, wh, bh, ln1_g, ln1_b,
     ff1_w, ff1_b, ff2_w, ff2_b, ln2_g, ln2_b) = params

    # head-major Q/K/V projections, per-head dim zero-padded DK -> DK_PAD
    qkv = jnp.stack([wq, wk, wv])                              # (3, D, D)
    qkv = qkv.reshape(3, D_MODEL, NUM_HEADS, DK)
    qkv = jnp.transpose(qkv, (0, 2, 1, 3))                     # (3, nh, D, dk)
    qkv = qkv.reshape(3 * NUM_HEADS, D_MODEL, DK)
    qkv = jnp.pad(qkv, ((0, 0), (0, 0), (0, DK_PAD - DK)))     # (3*nh, D, DK_PAD)

    # per-head row blocks of W_h, zero-padded DK -> DK_PAD
    wh_h = wh.reshape(NUM_HEADS, DK, D_MODEL)
    wh_h = jnp.pad(wh_h, ((0, 0), (0, DK_PAD - DK), (0, 0)))   # (nh, DK_PAD, D)

    attn_w = jnp.concatenate([qkv, wh_h], axis=0)              # (4*nh, D, D)

    # FFN slab: W1 stored transposed (FF, D) so both entries share one shape
    ffn_w = jnp.stack([ff1_w.T, ff2_w])                        # (2, FF, D)

    # all bias / LayerNorm row-vectors in one (8, FF) slab
    def pad_row(r):
        return jnp.pad(r, (0, FF_DIM - r.shape[0]))

    vecs = jnp.stack([pad_row(bh), pad_row(ln1_g), pad_row(ln1_b),
                      ff1_b, pad_row(ff2_b), pad_row(ln2_g), pad_row(ln2_b),
                      jnp.zeros((FF_DIM,), jnp.float32)])      # (8, FF)
    return attn_w, ffn_w, vecs


def encoder_layer_pallas(x_flat, attn_w, ffn_w, vecs):
    return pl.pallas_call(
        encoder_layer_kernel,
        out_shape=jax.ShapeDtypeStruct(x_flat.shape, jnp.float32),
        in_specs=[pl.BlockSpec(memory_space=pltpu.MemorySpace.VMEM)] * 4,
        out_specs=pl.BlockSpec(memory_space=pltpu.MemorySpace.VMEM),
    )(x_flat, attn_w, ffn_w, vecs)


@jax.jit
def encoder_layer_forward(x, params):
    attn_w, ffn_w, vecs = pack_params(params)
    xf = x.reshape(-1, x.shape[-1])            # flatten (B,S,D) -> (B*S, D)
    out = encoder_layer_pallas(xf, attn_w, ffn_w, vecs)
    return out.reshape(x.shape)


def encoder_layer_ref(x, params):
    """Pure-JAX f32 reference mirroring the PyTorch EncoderLayer (eval mode)."""
    (wq, wk, wv, wh, bh, ln1_g, ln1_b,
     ff1_w, ff1_b, ff2_w, ff2_b, ln2_g, ln2_b) = params
    b, s, d = x.shape

    def split_heads(t):
        return t.reshape(b, s, NUM_HEADS, DK).transpose(0, 2, 1, 3)

    q = split_heads(x @ wq) / np.sqrt(DK)
    k = split_heads(x @ wk)
    v = split_heads(x @ wv)
    scores = jnp.einsum('bhqd,bhkd->bhqk', q, k)
    a = jax.nn.softmax(scores, axis=-1)
    ctx = jnp.einsum('bhqk,bhkd->bhqd', a, v)
    hcat = ctx.transpose(0, 2, 1, 3).reshape(b, s, d)
    attn = hcat @ wh + bh
    out1 = _layernorm(x + attn, ln1_g, ln1_b, LN_EPS)
    ffn = jnp.maximum(out1 @ ff1_w + ff1_b, 0.0) @ ff2_w + ff2_b
    out2 = _layernorm(out1 + ffn, ln2_g, ln2_b, LN_EPS)
    return out2


def init_params(key):
    ks = jax.random.split(key, 13)

    def w(k, shape, scale=0.1):
        return (scale * jax.random.normal(k, shape)).astype(jnp.float32)

    return (
        w(ks[0], (D_MODEL, D_MODEL)),            # W_q  (stored (in, out))
        w(ks[1], (D_MODEL, D_MODEL)),            # W_k
        w(ks[2], (D_MODEL, D_MODEL)),            # W_v
        w(ks[3], (D_MODEL, D_MODEL)),            # W_h
        w(ks[4], (D_MODEL,), 0.05),              # b_h
        1.0 + w(ks[5], (D_MODEL,), 0.05),        # layernorm1 gamma
        w(ks[6], (D_MODEL,), 0.05),              # layernorm1 beta
        w(ks[7], (D_MODEL, FF_DIM)),             # FFN W1 (in, out)
        w(ks[8], (FF_DIM,), 0.05),               # FFN b1
        w(ks[9], (FF_DIM, D_MODEL)),             # FFN W2 (in, out)
        w(ks[10], (D_MODEL,), 0.05),             # FFN b2
        1.0 + w(ks[11], (D_MODEL,), 0.05),       # layernorm2 gamma
        w(ks[12], (D_MODEL,), 0.05),             # layernorm2 beta
    )


if __name__ == "__main__":
    key = jax.random.PRNGKey(0)
    kx, kp = jax.random.split(key)
    x = jax.random.normal(kx, (B, S, D_MODEL), dtype=jnp.float32)
    params = init_params(kp)

    out = encoder_layer_forward(x, params)
    out = jax.block_until_ready(out)
    ref = encoder_layer_ref(x, params)

    # bf16 MXU operands (f32 accumulation) + approx softmax reciprocal
    # => compare against the pure-f32 reference at a matching tolerance.
    np.testing.assert_allclose(np.asarray(out), np.asarray(ref),
                               rtol=3e-2, atol=3e-2)
    print("KERNEL_OK")
</pallas_src>

<mosaic_0001>
module attributes {stable_mosaic.version = 11 : i64} {
  func.func @encoder_layer_kernel(%arg0: memref<16x16xf32, #tpu.memory_space<vmem>>, %arg1: memref<8x16x16xf32, #tpu.memory_space<vmem>>, %arg2: memref<2x64x16xf32, #tpu.memory_space<vmem>>, %arg3: memref<8x64xf32, #tpu.memory_space<vmem>>, %arg4: memref<16x16xf32, #tpu.memory_space<vmem>>) attributes {dimension_semantics = [], scalar_prefetch = 0 : i64, scratch_operands = 0 : i64, tpu.core_type = #tpu.core_type<tc>} {
    %c0 = arith.constant 0 : index
    %c0_0 = arith.constant 0 : index
    %0 = vector.load %arg0[%c0, %c0_0] : memref<16x16xf32, #tpu.memory_space<vmem>>, vector<16x16xf32>
    %1 = arith.truncf %0 : vector<16x16xf32> to vector<16x16xbf16>
    %c0_1 = arith.constant 0 : index
    %c0_2 = arith.constant 0 : index
    %c0_3 = arith.constant 0 : index
    %2 = vector.load %arg1[%c0_1, %c0_2, %c0_3] : memref<8x16x16xf32, #tpu.memory_space<vmem>>, vector<8x16x16xf32>
    %3 = arith.truncf %2 : vector<8x16x16xf32> to vector<8x16x16xbf16>
    %c0_4 = arith.constant 0 : index
    %c0_5 = arith.constant 0 : index
    %c0_6 = arith.constant 0 : index
    %4 = vector.load %arg2[%c0_4, %c0_5, %c0_6] : memref<2x64x16xf32, #tpu.memory_space<vmem>>, vector<2x64x16xf32>
    %5 = arith.truncf %4 : vector<2x64x16xf32> to vector<2x64x16xbf16>
    %c0_7 = arith.constant 0 : index
    %c0_8 = arith.constant 0 : index
    %6 = vector.load %arg3[%c0_7, %c0_8] : memref<8x64xf32, #tpu.memory_space<vmem>>, vector<8x64xf32>
    %7 = vector.extract_strided_slice %6 {offsets = [0, 0], sizes = [1, 16], strides = [1, 1]} : vector<8x64xf32> to vector<1x16xf32>
    %8 = vector.extract_strided_slice %6 {offsets = [1, 0], sizes = [1, 16], strides = [1, 1]} : vector<8x64xf32> to vector<1x16xf32>
    %9 = vector.extract_strided_slice %6 {offsets = [2, 0], sizes = [1, 16], strides = [1, 1]} : vector<8x64xf32> to vector<1x16xf32>
    %10 = vector.extract_strided_slice %6 {offsets = [3, 0], sizes = [1, 64], strides = [1, 1]} : vector<8x64xf32> to vector<1x64xf32>
    %11 = vector.extract_strided_slice %6 {offsets = [4, 0], sizes = [1, 16], strides = [1, 1]} : vector<8x64xf32> to vector<1x16xf32>
    %12 = vector.extract_strided_slice %6 {offsets = [5, 0], sizes = [1, 16], strides = [1, 1]} : vector<8x64xf32> to vector<1x16xf32>
    %13 = vector.extract_strided_slice %6 {offsets = [6, 0], sizes = [1, 16], strides = [1, 1]} : vector<8x64xf32> to vector<1x16xf32>
    %14 = vector.shape_cast %1 : vector<16x16xbf16> to vector<1x16x16xbf16>
    %15 = vector.shape_cast %14 : vector<1x16x16xbf16> to vector<1x16x16xbf16>
    %16 = vector.broadcast %15 : vector<1x16x16xbf16> to vector<6x16x16xbf16>
    %17 = vector.extract_strided_slice %3 {offsets = [0, 0, 0], sizes = [6, 16, 16], strides = [1, 1, 1]} : vector<8x16x16xbf16> to vector<6x16x16xbf16>
    "tpu.trace_start"() <{level = 10 : i32, message = "gnd,gde->gne"}> : () -> ()
    %cst = arith.constant dense<0.000000e+00> : vector<6x16x16xf32>
    %18 = tpu.matmul %16, %17, %cst {dimension_numbers = #tpu.dot_dimension_numbers<[2], [1], [1], [2], [0, 0, 0, 1, 1, 2], [0], [0]>} : vector<6x16x16xbf16>, vector<6x16x16xbf16>, vector<6x16x16xf32> -> vector<6x16x16xf32>
    "tpu.trace_stop"() : () -> ()
    %19 = vector.extract_strided_slice %18 {offsets = [0, 0, 0], sizes = [2, 16, 16], strides = [1, 1, 1]} : vector<6x16x16xf32> to vector<2x16x16xf32>
    %20 = vector.extract_strided_slice %18 {offsets = [2, 0, 0], sizes = [2, 16, 16], strides = [1, 1, 1]} : vector<6x16x16xf32> to vector<2x16x16xf32>
    %21 = vector.extract_strided_slice %18 {offsets = [4, 0, 0], sizes = [2, 16, 16], strides = [1, 1, 1]} : vector<6x16x16xf32> to vector<2x16x16xf32>
    %22 = arith.truncf %19 : vector<2x16x16xf32> to vector<2x16x16xbf16>
    %23 = arith.truncf %20 : vector<2x16x16xf32> to vector<2x16x16xbf16>
    "tpu.trace_start"() <{level = 10 : i32, message = "hqd,hkd->hqk"}> : () -> ()
    %cst_9 = arith.constant dense<0.000000e+00> : vector<2x16x16xf32>
    %24 = tpu.matmul %22, %23, %cst_9 {dimension_numbers = #tpu.dot_dimension_numbers<[2], [2], [1], [1], [0, 0, 0, 1, 1, 1], [0], [0]>} : vector<2x16x16xbf16>, vector<2x16x16xbf16>, vector<2x16x16xf32> -> vector<2x16x16xf32>
    "tpu.trace_stop"() : () -> ()
    %cst_10 = arith.constant 0.353553385 : f32
    %25 = vector.broadcast %cst_10 : f32 to vector<2x16x16xf32>
    %26 = arith.mulf %24, %25 : vector<2x16x16xf32>
    %27 = tpu.iota {dimensions = array<i32: 0>} : vector<16x16xi32>
    %28 = arith.sitofp %27 : vector<16x16xi32> to vector<16x16xf32>
    %cst_11 = arith.constant 1.250000e-01 : f32
    %29 = vector.broadcast %cst_11 : f32 to vector<16x16xf32>
    %30 = arith.mulf %28, %29 : vector<16x16xf32>
    %31 = math.floor %30 : vector<16x16xf32>
    %32 = tpu.iota {dimensions = array<i32: 1>} : vector<16x16xi32>
    %33 = arith.sitofp %32 : vector<16x16xi32> to vector<16x16xf32>
    %cst_12 = arith.constant 1.250000e-01 : f32
    %34 = vector.broadcast %cst_12 : f32 to vector<16x16xf32>
    %35 = arith.mulf %33, %34 : vector<16x16xf32>
    %36 = math.floor %35 : vector<16x16xf32>
    %37 = arith.cmpf oeq, %31, %36 : vector<16x16xf32>
    %38 = vector.shape_cast %37 : vector<16x16xi1> to vector<1x16x16xi1>
    %cst_13 = arith.constant -1.000000e+30 : f32
    %39 = vector.shape_cast %38 : vector<1x16x16xi1> to vector<1x16x16xi1>
    %40 = vector.broadcast %39 : vector<1x16x16xi1> to vector<2x16x16xi1>
    %41 = vector.broadcast %cst_13 : f32 to vector<2x16x16xf32>
    %42 = arith.select %40, %26, %41 : vector<2x16x16xi1>, vector<2x16x16xf32>
    %cst_14 = arith.constant dense<0xFF800000> : vector<2x16xf32>
    %43 = vector.multi_reduction <maximumf>, %42, %cst_14 [2] : vector<2x16x16xf32> to vector<2x16xf32>
    %44 = vector.shape_cast %43 : vector<2x16xf32> to vector<2x16x1xf32>
    %45 = vector.broadcast %44 : vector<2x16x1xf32> to vector<2x16x16xf32>
    %46 = arith.subf %42, %45 : vector<2x16x16xf32>
    %47 = math.exp %46 : vector<2x16x16xf32>
    %cst_15 = arith.constant dense<0.000000e+00> : vector<2x16xf32>
    %48 = vector.multi_reduction <add>, %47, %cst_15 [2] : vector<2x16x16xf32> to vector<2x16xf32>
    %49 = vector.shape_cast %48 : vector<2x16xf32> to vector<2x16x1xf32>
    %50 = tpu.reciprocal %49 {approx = true} : vector<2x16x1xf32> -> vector<2x16x1xf32>
    %51 = vector.broadcast %50 : vector<2x16x1xf32> to vector<2x16x16xf32>
    %52 = arith.mulf %47, %51 : vector<2x16x16xf32>
    %53 = arith.truncf %52 : vector<2x16x16xf32> to vector<2x16x16xbf16>
    %54 = arith.truncf %21 : vector<2x16x16xf32> to vector<2x16x16xbf16>
    "tpu.trace_start"() <{level = 10 : i32, message = "hqk,hkd->hqd"}> : () -> ()
    %cst_16 = arith.constant dense<0.000000e+00> : vector<2x16x16xf32>
    %55 = tpu.matmul %53, %54, %cst_16 {dimension_numbers = #tpu.dot_dimension_numbers<[2], [1], [1], [2], [0, 0, 0, 1, 1, 2], [0], [0]>} : vector<2x16x16xbf16>, vector<2x16x16xbf16>, vector<2x16x16xf32> -> vector<2x16x16xf32>
    "tpu.trace_stop"() : () -> ()
    %56 = arith.truncf %55 : vector<2x16x16xf32> to vector<2x16x16xbf16>
    %57 = vector.extract_strided_slice %56 {offsets = [0, 0, 0], sizes = [1, 16, 16], strides = [1, 1, 1]} : vector<2x16x16xbf16> to vector<1x16x16xbf16>
    %58 = vector.shape_cast %57 : vector<1x16x16xbf16> to vector<16x16xbf16>
    %59 = vector.extract_strided_slice %3 {offsets = [6, 0, 0], sizes = [1, 16, 16], strides = [1, 1, 1]} : vector<8x16x16xbf16> to vector<1x16x16xbf16>
    %60 = vector.shape_cast %59 : vector<1x16x16xbf16> to vector<16x16xbf16>
    %cst_17 = arith.constant dense<0.000000e+00> : vector<16x16xf32>
    %61 = tpu.matmul %58, %60, %cst_17 {dimension_numbers = #tpu.dot_dimension_numbers<[1], [0], [0], [1], [0, 0, 1, 1], [], []>} : vector<16x16xbf16>, vector<16x16xbf16>, vector<16x16xf32> -> vector<16x16xf32>
    %62 = vector.extract_strided_slice %56 {offsets = [1, 0, 0], sizes = [1, 16, 16], strides = [1, 1, 1]} : vector<2x16x16xbf16> to vector<1x16x16xbf16>
    %63 = vector.shape_cast %62 : vector<1x16x16xbf16> to vector<16x16xbf16>
    %64 = vector.extract_strided_slice %3 {offsets = [7, 0, 0], sizes = [1, 16, 16], strides = [1, 1, 1]} : vector<8x16x16xbf16> to vector<1x16x16xbf16>
    %65 = vector.shape_cast %64 : vector<1x16x16xbf16> to vector<16x16xbf16>
    %cst_18 = arith.constant dense<0.000000e+00> : vector<16x16xf32>
    %66 = tpu.matmul %63, %65, %cst_18 {dimension_numbers = #tpu.dot_dimension_numbers<[1], [0], [0], [1], [0, 0, 1, 1], [], []>} : vector<16x16xbf16>, vector<16x16xbf16>, vector<16x16xf32> -> vector<16x16xf32>
    %67 = arith.addf %61, %66 : vector<16x16xf32>
    %68 = vector.broadcast %7 : vector<1x16xf32> to vector<16x16xf32>
    %69 = arith.addf %67, %68 : vector<16x16xf32>
    %70 = arith.addf %0, %69 : vector<16x16xf32>
    %cst_19 = arith.constant dense<0.000000e+00> : vector<16xf32>
    %71 = vector.multi_reduction <add>, %70, %cst_19 [1] : vector<16x16xf32> to vector<16xf32>
    %72 = vector.shape_cast %71 : vector<16xf32> to vector<16x1xf32>
    %cst_20 = arith.constant 1.600000e+01 : f32
    %73 = vector.broadcast %cst_20 : f32 to vector<16x1xf32>
    %74 = arith.divf %72, %73 : vector<16x1xf32>
    %75 = vector.broadcast %74 : vector<16x1xf32> to vector<16x16xf32>
    %76 = arith.subf %70, %75 : vector<16x16xf32>
    %77 = arith.mulf %76, %76 : vector<16x16xf32>
    %cst_21 = arith.constant dense<0.000000e+00> : vector<16xf32>
    %78 = vector.multi_reduction <add>, %77, %cst_21 [1] : vector<16x16xf32> to vector<16xf32>
    %79 = vector.shape_cast %78 : vector<16xf32> to vector<16x1xf32>
    %cst_22 = arith.constant 1.600000e+01 : f32
    %80 = vector.broadcast %cst_22 : f32 to vector<16x1xf32>
    %81 = arith.divf %79, %80 : vector<16x1xf32>
    %cst_23 = arith.constant 9.99999997E-7 : f32
    %82 = vector.broadcast %cst_23 : f32 to vector<16x1xf32>
    %83 = arith.addf %81, %82 : vector<16x1xf32>
    %84 = math.rsqrt %83 : vector<16x1xf32>
    %85 = vector.broadcast %84 : vector<16x1xf32> to vector<16x16xf32>
    %86 = arith.mulf %76, %85 : vector<16x16xf32>
    %87 = vector.broadcast %8 : vector<1x16xf32> to vector<16x16xf32>
    %88 = arith.mulf %86, %87 : vector<16x16xf32>
    %89 = vector.broadcast %9 : vector<1x16xf32> to vector<16x16xf32>
    %90 = arith.addf %88, %89 : vector<16x16xf32>
    %91 = arith.truncf %90 : vector<16x16xf32> to vector<16x16xbf16>
    %92 = vector.extract_strided_slice %5 {offsets = [0, 0, 0], sizes = [1, 64, 16], strides = [1, 1, 1]} : vector<2x64x16xbf16> to vector<1x64x16xbf16>
    %93 = vector.shape_cast %92 : vector<1x64x16xbf16> to vector<64x16xbf16>
    "tpu.trace_start"() <{level = 10 : i32, message = "nd,fd->nf"}> : () -> ()
    %cst_24 = arith.constant dense<0.000000e+00> : vector<16x64xf32>
    %94 = tpu.matmul %91, %93, %cst_24 {dimension_numbers = #tpu.dot_dimension_numbers<[1], [1], [0], [0], [0, 0, 1, 0], [], []>} : vector<16x16xbf16>, vector<64x16xbf16>, vector<16x64xf32> -> vector<16x64xf32>
    "tpu.trace_stop"() : () -> ()
    %95 = vector.broadcast %10 : vector<1x64xf32> to vector<16x64xf32>
    %96 = arith.addf %94, %95 : vector<16x64xf32>
    %cst_25 = arith.constant 0.000000e+00 : f32
    %97 = vector.broadcast %cst_25 : f32 to vector<16x64xf32>
    %98 = arith.maximumf %96, %97 : vector<16x64xf32>
    %99 = arith.truncf %98 : vector<16x64xf32> to vector<16x64xbf16>
    %100 = vector.extract_strided_slice %5 {offsets = [1, 0, 0], sizes = [1, 64, 16], strides = [1, 1, 1]} : vector<2x64x16xbf16> to vector<1x64x16xbf16>
    %101 = vector.shape_cast %100 : vector<1x64x16xbf16> to vector<64x16xbf16>
    "tpu.trace_start"() <{level = 10 : i32, message = "nf,fd->nd"}> : () -> ()
    %cst_26 = arith.constant dense<0.000000e+00> : vector<16x16xf32>
    %102 = tpu.matmul %99, %101, %cst_26 {dimension_numbers = #tpu.dot_dimension_numbers<[1], [0], [0], [1], [0, 0, 1, 1], [], []>} : vector<16x64xbf16>, vector<64x16xbf16>, vector<16x16xf32> -> vector<16x16xf32>
    "tpu.trace_stop"() : () -> ()
    %103 = vector.broadcast %11 : vector<1x16xf32> to vector<16x16xf32>
    %104 = arith.addf %102, %103 : vector<16x16xf32>
    %105 = arith.addf %90, %104 : vector<16x16xf32>
    %cst_27 = arith.constant dense<0.000000e+00> : vector<16xf32>
    %106 = vector.multi_reduction <add>, %105, %cst_27 [1] : vector<16x16xf32> to vector<16xf32>
    %107 = vector.shape_cast %106 : vector<16xf32> to vector<16x1xf32>
    %cst_28 = arith.constant 1.600000e+01 : f32
    %108 = vector.broadcast %cst_28 : f32 to vector<16x1xf32>
    %109 = arith.divf %107, %108 : vector<16x1xf32>
    %110 = vector.broadcast %109 : vector<16x1xf32> to vector<16x16xf32>
    %111 = arith.subf %105, %110 : vector<16x16xf32>
    %112 = arith.mulf %111, %111 : vector<16x16xf32>
    %cst_29 = arith.constant dense<0.000000e+00> : vector<16xf32>
    %113 = vector.multi_reduction <add>, %112, %cst_29 [1] : vector<16x16xf32> to vector<16xf32>
    %114 = vector.shape_cast %113 : vector<16xf32> to vector<16x1xf32>
    %cst_30 = arith.constant 1.600000e+01 : f32
    %115 = vector.broadcast %cst_30 : f32 to vector<16x1xf32>
    %116 = arith.divf %114, %115 : vector<16x1xf32>
    %cst_31 = arith.constant 9.99999997E-7 : f32
    %117 = vector.broadcast %cst_31 : f32 to vector<16x1xf32>
    %118 = arith.addf %116, %117 : vector<16x1xf32>
    %119 = math.rsqrt %118 : vector<16x1xf32>
    %120 = vector.broadcast %119 : vector<16x1xf32> to vector<16x16xf32>
    %121 = arith.mulf %111, %120 : vector<16x16xf32>
    %122 = vector.broadcast %12 : vector<1x16xf32> to vector<16x16xf32>
    %123 = arith.mulf %121, %122 : vector<16x16xf32>
    %124 = vector.broadcast %13 : vector<1x16xf32> to vector<16x16xf32>
    %125 = arith.addf %123, %124 : vector<16x16xf32>
    %c0_32 = arith.constant 0 : index
    %c0_33 = arith.constant 0 : index
    %126 = vector.load %arg4[%c0_32, %c0_33] : memref<16x16xf32, #tpu.memory_space<vmem>>, vector<16x16xf32>
    tpu.vector_store %arg4[%c0_32, %c0_33], %125 {strides = array<i32>} : memref<16x16xf32, #tpu.memory_space<vmem>>, vector<16x16xf32>,
    return
  }
}

</mosaic_0001>

<bundles_post_ra>
// kernel: encoder_layer_forward.1
= control target key start
LH: loop header
LB: loop body
LE: loop exit
PB: predicated region body
PF: predicated region fallthrough
CT: control target
= control target key end

     0   :  { %v1088_v3 = vmov 0.0   ;;  %vm1089_vm0 = vmmov 0   ;;  %vm71_vm1 = vcmask 130048   ;;  %s1364_s0 = inlined_call_operand.vmem [shape: f32[16,16], index: 0, kind: input, shape index: {}]   ;;  %s1365_s1 = inlined_call_operand.vmem [shape: f32[8,16,16], index: 1, kind: input, shape index: {}]   ;;  %s1366_s2 = inlined_call_operand.vmem [shape: f32[2,64,16], index: 2, kind: input, shape index: {}]   ;;  %s1367_s3 = inlined_call_operand.vmem [shape: f32[8,64], index: 3, kind: input, shape index: {}]   ;;  %s1368_s4 = inlined_call_operand.hbm [shape: f32[16,16], index: 4, kind: output, shape index: {}]  }
   0x1   :  { %v22_v0 = vld [vmem:[%s1365_s1] sm:$0xff]  ;;  %v23_v1 = vld [vmem:[%s1365_s1 + $0x8] sm:$0xff]  ;;  %939 = vmatprep.subr.bf16.mxu1 %v1088_v3  ;;  %951 = vmatprep.subr.bf16.mxu0 %v1088_v3  ;;  %v24_v10 = vld [vmem:[%s1365_s1 + $0x10] sm:$0xff] }
   0x2   :  { %v26_v2 = vld [vmem:[%s1365_s1 + $0x20] sm:$0xff]  ;;  %v38_v4 = vpack.c.bf16 %v23_v1, %v22_v0  ;;  %v27_v5 = vld [vmem:[%s1365_s1 + $0x28] sm:$0xff]  ;;  %941 = vmatprep.mubr.msk.bf16.mxu1 %vm1089_vm0, %v1088_v3  ;;  %953 = vmatprep.mubr.msk.bf16.mxu0 %vm1089_vm0, %v1088_v3  ;;  %v25_v11 = vld [vmem:[%s1365_s1 + $0x18] sm:$0xff] }
   0x3   :  { %v1135_v6 = vld [vmem:[%s1364_s0] sm:$0xff]  ;;  %v1140_v7 = vld [vmem:[%s1364_s0 + $0x8] sm:$0xff]  ;;  %v40_v8 = vpack.c.bf16 %v27_v5, %v26_v2  ;;  %v39_v12 = vpack.c.bf16 %v25_v11, %v24_v10 }
   0x4   :  { %v21_v9 = vpack.c.bf16 %v1140_v7, %v1135_v6  ;;  %940 = vmatpush3.bf16.msra.mxu1 %v38_v4  ;;  %v30_v13 = vld [vmem:[%s1365_s1 + $0x40] sm:$0xff]  ;;  %v31_v14 = vld [vmem:[%s1365_s1 + $0x48] sm:$0xff] }
   0x5   :  { %952 = vmatpush3.bf16.msra.mxu0 %v40_v8  ;;  %945 = vmatprep.subr.bf16.mxu1 %v1088_v3 }
   0x6   :  { %9 = vsyncpa [#allocation3], 0  ;;  %963 = vmatprep.subr.bf16.mxu0 %v1088_v3  ;;  %v42_v15 = vpack.c.bf16 %v31_v14, %v30_v13  ;;  %v28_v16 = vld [vmem:[%s1365_s1 + $0x30] sm:$0xff]  ;;  %v29_v17 = vld [vmem:[%s1365_s1 + $0x38] sm:$0xff]  ;;  %v423_v54 = vlaneseq  ;;  %vm788_vm4 = vcmask 523264  }
   0x7   :  { %942 = vmatmul.mubr.msk.bf16.vlgmr.msra.gmra.mrb[0].mxu1 %vm71_vm1, %v21_v9  ;;  %v41_v18 = vpack.c.bf16 %v29_v17, %v28_v16  ;;  %v32_v19 = vld [vmem:[%s1365_s1 + $0x50] sm:$0xff]  ;;  %v33_v20 = vld [vmem:[%s1365_s1 + $0x58] sm:$0xff] }
   0x8   :  { %954 = vmatmul.mubr.msk.bf16.vlgmr.msra.gmra.mrb[0].mxu0 %vm71_vm1, %v21_v9  ;;  %946 = vmatpush3.bf16.msra.mxu1 %v39_v12  ;;  %v43_v21 = vpack.c.bf16 %v33_v20, %v32_v19  ;;  %v1208_v55 = vshrl.u32 %v423_v54, 7  ;;  %v433_v56 = vand.u32 127, %v423_v54 }
   0x9   :  { %947 = vmatprep.mubr.msk.bf16.mxu1 %vm1089_vm0, %v1088_v3  ;;  %957 = vmatprep.subr.bf16.mxu1 %v1088_v3 }
   0xa   :  { %964 = vmatpush3.bf16.msra.mxu0 %v42_v15  ;;  %965 = vmatprep.mubr.msk.bf16.mxu0 %vm1089_vm0, %v1088_v3  ;;  %v425_v57 = vadd.s32 8, %v1208_v55  ;;  %v426_v58 = vcvt.s32.f32 %v1208_v55  ;;  %v434_v59 = vcvt.s32.f32 %v433_v56 }
   0xb   :  { %975 = vmatprep.subr.bf16.mxu0 %v1088_v3 }
   0xc   :  { %v427_v60 = vcvt.s32.f32 %v425_v57  ;;  %v428_v61 = vmul.f32 0.125, %v426_v58  ;;  %v435_v62 = vmul.f32 0.125, %v434_v59 }
   0xe   :  { %v429_v63 = vmul.f32 0.125, %v427_v60  ;;  %v430_v0 = vfloor.f32 %v428_v61  ;;  %v436_v1 = vfloor.f32 %v435_v62 }
   0xf   :  { %948 = vmatmul.mubr.msk.bf16.vlgmr.msra.gmra.mrb[4].mxu1 %vm71_vm1, %v21_v9 }
  0x10   :  { %958 = vmatpush3.bf16.msra.mxu1 %v41_v18  ;;  %959 = vmatprep.mubr.msk.bf16.mxu1 %vm1089_vm0, %v1088_v3  ;;  %v431_v2 = vfloor.f32 %v429_v63  ;;  %vm1212_vm2 = vcmp.eq.f32.partialorder %v430_v0, %v436_v1  ;;  %v34_v63 = vld [vmem:[%s1365_s1 + $0x60] sm:$0xff]  ;;  %v35_v0 = vld [vmem:[%s1365_s1 + $0x68] sm:$0xff] }
  0x11   :  { %966 = vmatmul.mubr.msk.bf16.vlgmr.msra.gmra.mrb[4].mxu0 %vm71_vm1, %v21_v9  ;;  %969 = vmatprep.subr.bf16.mxu1 %v1088_v3 }
  0x12   :  { %977 = vmatprep.mubr.msk.bf16.mxu0 %vm1089_vm0, %v1088_v3  ;;  %vm1216_vm3 = vcmp.eq.f32.partialorder %v431_v2, %v436_v1  ;;  %v44_v1 = vpack.c.bf16 %v35_v0, %v34_v63  ;;  %v36_v2 = vld [vmem:[%s1365_s1 + $0x70] sm:$0xff]  ;;  %v55_v63 = vld [vmem:[%s1366_s2 + $0x48] sm:$0xff] }
  0x13   :  { %v56_v0 = vld [vmem:[%s1366_s2 + $0x50] sm:$0xff] }
  0x17   :  { %960 = vmatmul.mubr.msk.bf16.vlgmr.msra.gmra.mrb[8].mxu1 %vm71_vm1, %v21_v9 }
  0x18   :  { %971 = vmatprep.mubr.msk.bf16.mxu1 %vm1089_vm0, %v1088_v3  ;;  %970 = vmatpush3.bf16.msra.mxu1 %v43_v21 }
  0x19   :  { %981 = vmatprep.subr.bf16.mxu1 %v1088_v3 }
  0x1f   :  { %972 = vmatmul.mubr.msk.bf16.vlgmr.msra.gmra.mrb[12].mxu1 %vm71_vm1, %v21_v9 }
  0x20   :  { %983 = vmatprep.mubr.msk.bf16.mxu1 %vm1089_vm0, %v1088_v3 }
  0xda   :  { %v109_v22 = vpop.f32.mrb[0].mxu1 }
  0xdb   :  { %v191_v23 = vpop.f32.mrb[0].mxu0  ;;  %v943_v24 = vpop.f32.mrb[1].mxu1 }
  0xdc   :  { %v955_v25 = vpop.f32.mrb[1].mxu0  ;;  %v112_v26 = vpop.f32.mrb[2].mxu1 }
  0xdd   :  { %v321_v27 = vpack.c.bf16 %v112_v26, %v109_v22  ;;  %v194_v28 = vpop.f32.mrb[2].mxu0  ;;  %v944_v29 = vpop.f32.mrb[3].mxu1 }
  0xde   :  { %v323_v30 = vpack.c.bf16 %v194_v28, %v191_v23  ;;  %v956_v31 = vpop.f32.mrb[3].mxu0 }
  0xe0   :  { %v329_v32 = vsel %vm71_vm1, %v323_v30, 0 }
  0xe1   :  { %976 = vmatpush3.bf16.xpose.msra.mxu0 %v329_v32 }
  0xe2   :  { %v150_v33 = vpop.f32.mrb[4].mxu1  ;;  %987 = vmatprep.subr.bf16.mxu0 %v1088_v3 }
  0xe3   :  { %v949_v34 = vpop.f32.mrb[5].mxu1 }
  0xe4   :  { %v153_v35 = vpop.f32.mrb[6].mxu1  ;;  %v273_v36 = vpop.f32.mrb[4].mxu0 }
  0xe5   :  { %v322_v37 = vpack.c.bf16 %v153_v35, %v150_v33  ;;  %v950_v38 = vpop.f32.mrb[7].mxu1  ;;  %v967_v39 = vpop.f32.mrb[5].mxu0 }
  0xe6   :  { %v276_v40 = vpop.f32.mrb[6].mxu0 }
  0xe7   :  { %v493_v41 = vpack.c.bf16 %v276_v40, %v273_v36  ;;  %v968_v42 = vpop.f32.mrb[7].mxu0 }
  0xe8   :  { %978 = vmatmul.mubr.msk.bf16.vlgmr.msra.gmra.mrb[8].mxu0 %vm71_vm1, %v321_v27 }
  0xe9   :  { %988 = vmatpush3.bf16.msra.mxu0 %v493_v41  ;;  %989 = vmatprep.mubr.msk.bf16.mxu0 %vm1089_vm0, %v1088_v3 }
  0xea   :  { %v232_v43 = vpop.f32.mrb[8].mxu1  ;;  %999 = vmatprep.subr.bf16.mxu0 %v1088_v3 }
  0xeb   :  { %v961_v44 = vpop.f32.mrb[9].mxu1 }
  0xec   :  { %v235_v45 = vpop.f32.mrb[10].mxu1 }
  0xed   :  { %v324_v46 = vpack.c.bf16 %v235_v45, %v232_v43  ;;  %v962_v47 = vpop.f32.mrb[11].mxu1 }
  0xef   :  { %v376_v48 = vsel %vm71_vm1, %v324_v46, 0 }
  0xf0   :  { %982 = vmatpush3.bf16.xpose.msra.mxu1 %v376_v48 }
  0xf1   :  { %993 = vmatprep.subr.bf16.mxu1 %v1088_v3 }
  0xf2   :  { %v314_v49 = vpop.f32.mrb[12].mxu1 }
  0xf3   :  { %v973_v50 = vpop.f32.mrb[13].mxu1 }
  0xf4   :  { %v317_v51 = vpop.f32.mrb[14].mxu1 }
  0xf5   :  { %v494_v52 = vpack.c.bf16 %v317_v51, %v314_v49  ;;  %v974_v53 = vpop.f32.mrb[15].mxu1 }
  0xf7   :  { %984 = vmatmul.mubr.msk.bf16.vlgmr.msra.gmra.mrb[16].mxu1 %vm71_vm1, %v322_v37 }
  0xf8   :  { %995 = vmatprep.mubr.msk.bf16.mxu1 %vm1089_vm0, %v1088_v3  ;;  %994 = vmatpush3.bf16.msra.mxu1 %v494_v52 }
  0xf9   :  { %1005 = vmatprep.subr.bf16.mxu1 %v1088_v3 }
 0x1bb   :  { %v365_v4 = vpop.f32.mrb[8].mxu0 }
 0x1bc   :  { %v419_v8 = vmul.f32 0.35355338, %v365_v4  ;;  %v979_v9 = vpop.f32.mrb[9].mxu0  ;;  %v37_v4 = vld [vmem:[%s1365_s1 + $0x78] sm:$0xff] }
 0x1bd   :  { %v368_v10 = vpop.f32.mrb[10].mxu0  ;;  %v45_v5 = vpack.c.bf16 %v37_v4, %v36_v2  ;;  %v57_v2 = vld [vmem:[%s1366_s2 + $0x58] sm:$0xff] }
 0x1be   :  { %v420_v12 = vmul.f32 0.35355338, %v368_v10  ;;  %v980_v13 = vpop.f32.mrb[11].mxu0  ;;  %v443_v14 = vsel %vm1212_vm2, %v419_v8, -1e+30  ;;  %v67_v4 = vpack.c.bf16 %v57_v2, %v56_v0 }
 0x1bf   :  { %v447_v15 = vsel %vm71_vm1, %v443_v14, -inf }
 0x1c0   :  { %448 = vmax.xlane.f32.xlu0 %v447_v15  ;;  %v444_v16 = vsel %vm1216_vm3, %v420_v12, -1e+30 }
 0x1c1   :  { %v450_v17 = vsel %vm71_vm1, %v444_v16, -inf }
 0x1c4   :  { %451 = vmax.xlane.f32.xlu0 %v450_v17 }
 0x1ca   :  { %v412_v18 = vpop.f32.mrb[16].mxu1 }
 0x1cb   :  { %v421_v19 = vmul.f32 0.35355338, %v412_v18  ;;  %v985_v20 = vpop.f32.mrb[17].mxu1 }
 0x1cc   :  { %v415_v21 = vpop.f32.mrb[18].mxu1 }
 0x1cd   :  { %v422_v22 = vmul.f32 0.35355338, %v415_v21  ;;  %v986_v23 = vpop.f32.mrb[19].mxu1  ;;  %v445_v24 = vsel %vm1212_vm2, %v421_v19, -1e+30 }
 0x1ce   :  { %v453_v25 = vsel %vm71_vm1, %v445_v24, -inf  ;;  %v1266_v23 = vld [vmem:[%s1367_s3] sm:$0xff] }
 0x1cf   :  { %454 = vmax.xlane.f32.xlu1 %v453_v25  ;;  %v446_v26 = vsel %vm1216_vm3, %v422_v22, -1e+30  ;;  %v675_v22 = vsub.s32 0, %v1208_v55 }
 0x1d0   :  { %v456_v27 = vsel %vm71_vm1, %v446_v26, -inf }
 0x1d3   :  { %457 = vmax.xlane.f32.xlu1 %v456_v27 }
 0x24d   :  { %v449_v28 = vpop.xlane.xlu0 %448 }
 0x24e   :  { %v459_v29 = vsub.f32 %v443_v14, %v449_v28 }
 0x250   :  { %v463_v30 = vmul.f32 1.442695, %v459_v29 }
 0x251   :  { %v452_v31 = vpop.xlane.xlu0 %451 }
 0x252   :  { %1040 = vpow2.f32 %v463_v30  ;;  %v460_v32 = vsub.f32 %v444_v16, %v452_v31 }
 0x254   :  { %v465_v33 = vmul.f32 1.442695, %v460_v32 }
 0x256   :  { %1042 = vpow2.f32 %v465_v33 }
 0x25c   :  { %v1041_v34 = vpop.eup %1040  ;;  %v455_v35 = vpop.xlane.xlu1 %454 }
 0x25d   :  { %v461_v36 = vsub.f32 %v445_v24, %v455_v35  ;;  %v471_v37 = vsel %vm71_vm1, %v1041_v34, 0.0  ;;  %v676_v24 = vrot.slane %v1266_v23, %v675_v22 }
 0x25e   :  { %472 = vadd.xlane.f32.xlu0 %v471_v37  ;;  %v46_v37 = vld [vmem:[%s1366_s2] sm:$0xff] }
 0x25f   :  { %v467_v38 = vmul.f32 1.442695, %v461_v36 }
 0x260   :  { %v1043_v39 = vpop.eup %1042  ;;  %v458_v40 = vpop.xlane.xlu1 %457 }
 0x261   :  { %1044 = vpow2.f32 %v467_v38  ;;  %v462_v41 = vsub.f32 %v446_v26, %v458_v40  ;;  %v474_v42 = vsel %vm71_vm1, %v1043_v39, 0.0  ;;  %v47_v38 = vld [vmem:[%s1366_s2 + $0x8] sm:$0xff] }
 0x262   :  { %475 = vadd.xlane.f32.xlu1 %v474_v42 }
 0x263   :  { %v469_v43 = vmul.f32 1.442695, %v462_v41 }
 0x265   :  { %1046 = vpow2.f32 %v469_v43 }
 0x26b   :  { %v1045_v44 = vpop.eup %1044 }
 0x26c   :  { %v477_v45 = vsel %vm71_vm1, %v1045_v44, 0.0 }
 0x26d   :  { %478 = vadd.xlane.f32.xlu0 %v477_v45 }
 0x26f   :  { %v1047_v46 = vpop.eup %1046 }
 0x270   :  { %v480_v47 = vsel %vm71_vm1, %v1047_v46, 0.0 }
 0x271   :  { %481 = vadd.xlane.f32.xlu1 %v480_v47 }
 0x2eb   :  { %v473_v48 = vpop.xlane.xlu0 %472 }
 0x2ec   :  { %1048 = vrcp.f32 %v473_v48 }
 0x2ef   :  { %v476_v49 = vpop.xlane.xlu1 %475 }
 0x2f0   :  { %1050 = vrcp.f32 %v476_v49  ;;  %v48_v49 = vld [vmem:[%s1366_s2 + $0x10] sm:$0xff] }
 0x2f6   :  { %v1049_v50 = vpop.eup %1048 }
 0x2f7   :  { %v487_v53 = vmul.f32 %v1049_v50, %v1041_v34  ;;  %v49_v50 = vld [vmem:[%s1366_s2 + $0x18] sm:$0xff] }
 0x2fa   :  { %v1051_v51 = vpop.eup %1050  ;;  %v479_v52 = vpop.xlane.xlu0 %478 }
 0x2fb   :  { %v488_v54 = vmul.f32 %v1051_v51, %v1043_v39  ;;  %1052 = vrcp.f32 %v479_v52  ;;  %v62_v39 = vpack.c.bf16 %v47_v38, %v46_v37  ;;  %v63_v51 = vpack.c.bf16 %v49_v50, %v48_v49 }
 0x2fd   :  { %v491_v56 = vpack.c.bf16 %v488_v54, %v487_v53  ;;  %v729_v40 = vsel %vm71_vm1, %v62_v39, 0  ;;  %v732_v52 = vsel %vm71_vm1, %v63_v51, 0  ;;  %v50_v53 = vld [vmem:[%s1366_s2 + $0x20] sm:$0xff]  ;;  %v51_v54 = vld [vmem:[%s1366_s2 + $0x28] sm:$0xff] }
 0x2fe   :  { %v482_v57 = vpop.xlane.xlu1 %481 }
 0x2ff   :  { %990 = vmatmul.mubr.msk.bf16.vlgmr.msra.gmra.mrb[12].mxu0 %vm71_vm1, %v491_v56  ;;  %1054 = vrcp.f32 %v482_v57  ;;  %v64_v56 = vpack.c.bf16 %v51_v54, %v50_v53 }
 0x300   :  { %1001 = vmatprep.mubr.msk.bf16.mxu0 %vm1089_vm0, %v1088_v3  ;;  %1000 = vmatpush3.bf16.msra.mxu0 %v45_v5 }
 0x301   :  { %1011 = vmatprep.subr.bf16.mxu0 %v1088_v3  ;;  %v735_v57 = vsel %vm71_vm1, %v64_v56, 0 }
 0x305   :  { %v1053_v58 = vpop.eup %1052 }
 0x306   :  { %v489_v60 = vmul.f32 %v1053_v58, %v1045_v44  ;;  %v52_v58 = vld [vmem:[%s1366_s2 + $0x30] sm:$0xff] }
 0x309   :  { %v1055_v59 = vpop.eup %1054 }
 0x30a   :  { %v490_v61 = vmul.f32 %v1055_v59, %v1047_v46  ;;  %v53_v59 = vld [vmem:[%s1366_s2 + $0x38] sm:$0xff] }
 0x30c   :  { %v492_v62 = vpack.c.bf16 %v490_v61, %v489_v60  ;;  %v65_v60 = vpack.c.bf16 %v53_v59, %v52_v58 }
 0x30e   :  { %996 = vmatmul.mubr.msk.bf16.vlgmr.msra.gmra.mrb[20].mxu1 %vm71_vm1, %v492_v62  ;;  %v738_v61 = vsel %vm71_vm1, %v65_v60, 0  ;;  %v54_v62 = vld [vmem:[%s1366_s2 + $0x40] sm:$0xff] }
 0x30f   :  { %1007 = vmatprep.mubr.msk.bf16.mxu1 %vm1089_vm0, %v1088_v3  ;;  %1006 = vmatpush3.bf16.msra.mxu1 %v44_v1  ;;  %v66_v1 = vpack.c.bf16 %v55_v63, %v54_v62 }
 0x310   :  { %1023 = vmatprep.subr.bf16.mxu1 %v1088_v3 }
 0x3d2   :  { %v532_v8 = vpop.f32.mrb[12].mxu0 }
 0x3d3   :  { %v991_v9 = vpop.f32.mrb[13].mxu0 }
 0x3d4   :  { %v535_v10 = vpop.f32.mrb[14].mxu0 }
 0x3d5   :  { %v583_v11 = vpack.c.bf16 %v535_v10, %v532_v8  ;;  %v992_v12 = vpop.f32.mrb[15].mxu0 }
 0x3d7   :  { %1008 = vmatmul.mubr.msk.bf16.vlgmr.msra.gmra.mrb[24].mxu1 %vm71_vm1, %v583_v11 }
 0x3d8   :  { %1031 = vmatprep.mubr.msk.bf16.mxu1 %vm1089_vm0, %v1088_v3  ;;  %1024 = vmatpush3.bf16.msra.mxu1 %v66_v1 }
 0x3d9   :  { %1025 = vmatprep.subr.bf16.mxu1 %v1088_v3 }
 0x3dc   :  { %1026 = vmatpush3.bf16.msra.mxu1 %v67_v4 }
 0x3dd   :  { %1027 = vmatprep.subr.bf16.mxu1 %v1088_v3 }
 0x3e1   :  { %v576_v13 = vpop.f32.mrb[20].mxu1 }
 0x3e2   :  { %v997_v14 = vpop.f32.mrb[21].mxu1 }
 0x3e3   :  { %v579_v15 = vpop.f32.mrb[22].mxu1 }
 0x3e4   :  { %v584_v16 = vpack.c.bf16 %v579_v15, %v576_v13  ;;  %v998_v17 = vpop.f32.mrb[23].mxu1  ;;  %v710_v13 = vsub.s32 1, %v1208_v55  ;;  %v716_v15 = vsub.s32 2, %v1208_v55 }
 0x3e6   :  { %1002 = vmatmul.mubr.msk.bf16.vlgmr.msra.gmra.mrb[16].mxu0 %vm71_vm1, %v584_v16  ;;  %v711_v14 = vrot.slane %v1266_v23, %v710_v13 }
 0x3e7   :  { %1019 = vmatprep.mubr.msk.bf16.mxu0 %vm1089_vm0, %v1088_v3  ;;  %1012 = vmatpush3.bf16.xpose.msra.mxu0 %v729_v40 }
 0x3e8   :  { %1013 = vmatprep.subr.bf16.mxu0 %v1088_v3 }
 0x3ef   :  { %1014 = vmatpush3.bf16.xpose.msra.mxu0 %v732_v52 }
 0x3f0   :  { %1015 = vmatprep.subr.bf16.mxu0 %v1088_v3 }
 0x3f7   :  { %1016 = vmatpush3.bf16.xpose.msra.mxu0 %v735_v57 }
 0x3f8   :  { %1017 = vmatprep.subr.bf16.mxu0 %v1088_v3 }
 0x3ff   :  { %1018 = vmatpush3.bf16.xpose.msra.mxu0 %v738_v61 }
 0x4aa   :  { %v666_v18 = vpop.f32.mrb[24].mxu1 }
 0x4ab   :  { %v1009_v19 = vpop.f32.mrb[25].mxu1 }
 0x4ac   :  { %v669_v20 = vpop.f32.mrb[26].mxu1 }
 0x4ad   :  { %v1010_v21 = vpop.f32.mrb[27].mxu1 }
 0x4ae   :  { %v717_v21 = vrot.slane %v1266_v23, %v716_v15 }
 0x4b9   :  { %v622_v25 = vpop.f32.mrb[16].mxu0 }
 0x4ba   :  { %v667_v26 = vadd.f32 %v666_v18, %v622_v25  ;;  %v1003_v27 = vpop.f32.mrb[17].mxu0 }
 0x4bb   :  { %v625_v28 = vpop.f32.mrb[18].mxu0  ;;  %v58_v27 = vld [vmem:[%s1366_s2 + $0x60] sm:$0xff] }
 0x4bc   :  { %v677_v29 = vadd.f32 %v676_v24, %v667_v26  ;;  %v670_v30 = vadd.f32 %v669_v20, %v625_v28  ;;  %v1004_v31 = vpop.f32.mrb[19].mxu0  ;;  %v59_v28 = vld [vmem:[%s1366_s2 + $0x68] sm:$0xff] }
 0x4bd   :  { %v61_v31 = vld [vmem:[%s1366_s2 + $0x78] sm:$0xff] }
 0x4be   :  { %v678_v32 = vadd.f32 %v676_v24, %v670_v30  ;;  %v679_v33 = vadd.f32 %v677_v29, %v1135_v6  ;;  %v68_v29 = vpack.c.bf16 %v59_v28, %v58_v27  ;;  %v60_v30 = vld [vmem:[%s1366_s2 + $0x70] sm:$0xff]  ;;  %s1090_s2 = smov [#allocation2]  }
 0x4bf   :  { %s880_s27 = sshll.u32 %s1090_s2, 4  ;;  %s881_s27 = int_to_ptr.vmem [resolvable:$true] %s880_s27 }
 0x4c0   :  { %v681_v34 = vsel %vm71_vm1, %v679_v33, 0.0  ;;  %v680_v35 = vadd.f32 %v678_v32, %v1140_v7  ;;  %1028 = vmatpush3.bf16.msra.mxu1 %v68_v29  ;;  %v69_v32 = vpack.c.bf16 %v61_v31, %v60_v30  ;;  %s1064_s28 = scalar_lea.vmem %s881_s27, 256  ;;  %p1069_p1 = scmp.lt.s32.totalorder %s881_s27, %s881_s27 }
 0x4c1   :  { %682 = vadd.xlane.f32.xlu0 %v681_v34  ;;  %1029 = vmatprep.subr.bf16.mxu1 %v1088_v3  ;;  %p1065_p0 = scmp.ne.s32.totalorder %s881_s27, %s1064_s28  ;;  %p1070_p2 = scmp.lt.s32.totalorder %s1064_s28, %s1064_s28 }
 0x4c2   :  { %v684_v36 = vsel %vm71_vm1, %v680_v35, 0.0 }
 0x4c3   :  { %685 = vadd.xlane.f32.xlu1 %v684_v36  ;;  %p1071_p3 = por %p1070_p2, %p1069_p1 }
 0x4c4   :  { %1030 = vmatpush3.bf16.msra.mxu1 %v69_v32 }
 0x4c5   :  { %p1072_p4 = pnand %p1071_p3, %p1065_p0 }
 0x54e   :  { %v683_v6 = vpop.xlane.xlu0 %682 }
 0x54f   :  { %v688_v7 = vmul.f32 0.0625, %v683_v6 }
 0x550   :  { %v686_v41 = vpop.xlane.xlu1 %685 }
 0x551   :  { %v690_v42 = vsub.f32 %v679_v33, %v688_v7  ;;  %v689_v43 = vmul.f32 0.0625, %v686_v41  ;;  %v723_v33 = vsub.s32 3, %v1208_v55  ;;  %v786_v41 = vsub.s32 4, %v1208_v55 }
 0x553   :  { %v691_v44 = vsub.f32 %v680_v35, %v689_v43  ;;  %v692_v45 = vmul.f32 %v690_v42, %v690_v42  ;;  %v724_v34 = vrot.slane %v1266_v23, %v723_v33 }
 0x555   :  { %v694_v46 = vsel %vm71_vm1, %v692_v45, 0.0  ;;  %v693_v47 = vmul.f32 %v691_v44, %v691_v44 }
 0x556   :  { %695 = vadd.xlane.f32.xlu0 %v694_v46 }
 0x557   :  { %v697_v48 = vsel %vm71_vm1, %v693_v47, 0.0 }
 0x558   :  { %698 = vadd.xlane.f32.xlu1 %v697_v48 }
 0x5e3   :  { %v696_v5 = vpop.xlane.xlu0 %695 }
 0x5e4   :  { %v700_v8 = vmul.f32 0.0625, %v696_v5 }
 0x5e5   :  { %v699_v9 = vpop.xlane.xlu1 %698 }
 0x5e6   :  { %v702_v10 = vadd.f32 1e-06, %v700_v8  ;;  %v701_v11 = vmul.f32 0.0625, %v699_v9  ;;  %v863_v9 = vsub.s32 5, %v1208_v55 }
 0x5e8   :  { %1056 = vrsqrt.f32 %v702_v10  ;;  %v703_v12 = vadd.f32 1e-06, %v701_v11  ;;  %v869_v10 = vsub.s32 6, %v1208_v55  ;;  %v864_v11 = vrot.slane %v1266_v23, %v863_v9 }
 0x5ea   :  { %1058 = vrsqrt.f32 %v703_v12 }
 0x5f2   :  { %v1057_v16 = vpop.eup %1056 }
 0x5f3   :  { %v706_v17 = vmul.f32 %v1057_v16, %v690_v42  ;;  %v787_v42 = vrot.slane %v1266_v23, %v786_v41 }
 0x5f4   :  { %v1059_v18 = vpop.eup %1058 }
 0x5f5   :  { %v712_v19 = vmul.f32 %v711_v14, %v706_v17  ;;  %v707_v20 = vmul.f32 %v1059_v18, %v691_v44 }
 0x5f7   :  { %v713_v22 = vmul.f32 %v711_v14, %v707_v20  ;;  %v718_v24 = vadd.f32 %v717_v21, %v712_v19  ;;  %v870_v14 = vrot.slane %v1266_v23, %v869_v10 }
 0x5f9   :  { %v719_v25 = vadd.f32 %v717_v21, %v713_v22 }
 0x5fb   :  { %v720_v26 = vpack.c.bf16 %v719_v25, %v718_v24 }
 0x5fd   :  { %1020 = vmatmul.mubr.msk.bf16.vlgmr.msra.gmra.mrb[20].mxu0 %vm71_vm1, %v720_v26 }
 0x6d0   :  { %v774_v35 = vpop.f32.mrb[20].mxu0 }
 0x6d1   :  { %v775_v36 = vadd.f32 %v774_v35, %v724_v34  ;;  %v1021_v37 = vpop.f32.mrb[21].mxu0 }
 0x6d2   :  { %v777_v38 = vpop.f32.mrb[22].mxu0 }
 0x6d3   :  { %v778_v39 = vadd.f32 %v777_v38, %v724_v34  ;;  %v1022_v3 = vpop.f32.mrb[23].mxu0  ;;  %v781_v40 = vmax.f32 %v775_v36, 0.0 }
 0x6d5   :  { %v782_v6 = vmax.f32 %v778_v39, 0.0 }
 0x6d7   :  { %v783_v7 = vpack.c.bf16 %v782_v6, %v781_v40 }
 0x6d9   :  { %1032 = vmatmul.mubr.msk.bf16.vlgmr.msra.gmra.mrb[28].mxu1 %vm788_vm4, %v783_v7 }
 0x7ac   :  { %v826_v43 = vpop.f32.mrb[28].mxu1 }
 0x7ad   :  { %v827_v44 = vadd.f32 %v826_v43, %v787_v42  ;;  %v1033_v45 = vpop.f32.mrb[29].mxu1 }
 0x7ae   :  { %v829_v46 = vpop.f32.mrb[30].mxu1 }
 0x7af   :  { %v830_v47 = vadd.f32 %v829_v46, %v787_v42  ;;  %v1034_v48 = vpop.f32.mrb[31].mxu1  ;;  %v833_v49 = vadd.f32 %v827_v44, %v718_v24 }
 0x7b1   :  { %v835_v50 = vsel %vm71_vm1, %v833_v49, 0.0  ;;  %v834_v51 = vadd.f32 %v830_v47, %v719_v25 }
 0x7b2   :  { %836 = vadd.xlane.f32.xlu0 %v835_v50 }
 0x7b3   :  { %v838_v52 = vsel %vm71_vm1, %v834_v51, 0.0 }
 0x7b4   :  { %839 = vadd.xlane.f32.xlu1 %v838_v52 }
 0x83f   :  { %v837_v53 = vpop.xlane.xlu0 %836 }
 0x840   :  { %v841_v54 = vmul.f32 0.0625, %v837_v53 }
 0x841   :  { %v840_v56 = vpop.xlane.xlu1 %839 }
 0x842   :  { %v843_v57 = vsub.f32 %v833_v49, %v841_v54  ;;  %v842_v58 = vmul.f32 0.0625, %v840_v56 }
 0x844   :  { %v844_v59 = vsub.f32 %v834_v51, %v842_v58  ;;  %v845_v60 = vmul.f32 %v843_v57, %v843_v57 }
 0x846   :  { %v847_v61 = vsel %vm71_vm1, %v845_v60, 0.0  ;;  %v846_v62 = vmul.f32 %v844_v59, %v844_v59 }
 0x847   :  { %848 = vadd.xlane.f32.xlu0 %v847_v61 }
 0x848   :  { %v850_v63 = vsel %vm71_vm1, %v846_v62, 0.0 }
 0x849   :  { %851 = vadd.xlane.f32.xlu1 %v850_v63 }
 0x8d4   :  { %v849_v0 = vpop.xlane.xlu0 %848 }
 0x8d5   :  { %v853_v1 = vmul.f32 0.0625, %v849_v0 }
 0x8d6   :  { %v852_v2 = vpop.xlane.xlu1 %851 }
 0x8d7   :  { %v855_v4 = vadd.f32 1e-06, %v853_v1  ;;  %v854_v5 = vmul.f32 0.0625, %v852_v2 }
 0x8d9   :  { %1060 = vrsqrt.f32 %v855_v4  ;;  %v856_v8 = vadd.f32 1e-06, %v854_v5 }
 0x8db   :  { %1062 = vrsqrt.f32 %v856_v8 }
 0x8e3   :  { %v1061_v12 = vpop.eup %1060 }
 0x8e4   :  { %v859_v13 = vmul.f32 %v1061_v12, %v843_v57 }
 0x8e5   :  { %v1063_v15 = vpop.eup %1062 }
 0x8e6   :  { %v860_v16 = vmul.f32 %v1063_v15, %v844_v59  ;;  %v865_v17 = vmul.f32 %v864_v11, %v859_v13 }
 0x8e8   :  { %v866_v18 = vmul.f32 %v864_v11, %v860_v16  ;;  %v871_v19 = vadd.f32 %v870_v14, %v865_v17 }
 0x8ea   :  { %v872_v20 = vadd.f32 %v870_v14, %v866_v18  ;;  %873 = vst.msk [vmem:[#allocation2] sm:$0xff] %vm71_vm1, %v871_v19 }
 0x8ec   :  { %874 = vst.msk [vmem:[#allocation2 + $0x8] sm:$0xff] %vm71_vm1, %v872_v20 }
 0x8ed   :  { %1075 = shalt.err (!%p1072_p4)
}
 0x8ee   :  { %s1076_s0 = scalar_lea.hbm %s1368_s4, 256 }
 0x8ef   :  { %p1077_p5 = scmp.ne.s32.totalorder %s1368_s4, %s1076_s0  ;;  %p1080_p6 = scmp.lt.u32.totalorder %s1076_s0, %s1368_s4 }
 0x8f1   :  { %p1082_p7 = pnand %p1080_p6, %p1077_p5 }
 0x8f3   :  { %1085 = shalt.err (!%p1082_p7)
}
 0x8f4   :  { %s1091_s9 = smov 128   ;;  %s1092_s10 = smov 8  }
 0x8f5   :  { %886 = dma.vmem_to_hbm [thread:$0]  %s881_s27, 256, %s1368_s4, [#allocation3], %s1091_s9, %s1091_s9, %s1092_s10  }
 0x8f6   :  { %1086 = dma.done.wait [#allocation3], 256  }
 0x8f7   :  { %1087 = vsyncadd [#allocation3], 4294967040 }
 0x8f8   :  { %890 = vsyncpa [#allocation3], 1 }

</bundles_post_ra>
